<compile_context>
chip_gen: v7x
topology: tpu7x:2x2x1
jax: 0.10.0
libtpu: 0.0.40
codegen_flags: <defaults>
</compile_context>

<pallas_src>
import functools
import math

import jax
import jax.numpy as jnp
from jax.experimental import pallas as pl
from jax.experimental.pallas import tpu as pltpu


_BLOCK_BYTES = 8 * 1024 * 1024          # ~8 MiB input blocks (amortizes ~0.35us/step)
_VMEM_LIMIT = 3 * _BLOCK_BYTES          # 2x double-buffered input + output/scratch slack
                                        # (24 MiB: raises v5e's 16 MiB default, well under
                                        #  v6e/v7x scoped 32 MiB and v7x 64 MiB physical)


def _path_length_norm_kernel(inv_l, g_ref, o_ref, acc_ref):
    """Accumulate sum(g^2) over column blocks; emit sqrt(mean_L) on the last step.

    g_ref  : (tile_b, tile_k, 128) input block (any float dtype; upcast to f32)
    o_ref  : (1, tile_b, 128) lane-dense output block (norm broadcast across lanes)
    acc_ref: (tile_b, 128) f32 lane-wide accumulator (no per-step cross-lane reduce,
             no masked 1-lane read-modify-write)
    """
    j = pl.program_id(1)

    @pl.when(j == 0)
    def _():
        acc_ref[...] = jnp.zeros_like(acc_ref)

    g = g_ref[...].astype(jnp.float32)            # (tile_b, tile_k, 128)
    acc_ref[...] += jnp.sum(g * g, axis=1)        # (tile_b, 128): lane-wide accumulate

    @pl.when(j == pl.num_programs(1) - 1)
    def _():
        row_sumsq = jnp.sum(acc_ref[...], axis=-1, keepdims=True)   # single XLU reduce
        norm = jnp.sqrt(row_sumsq * inv_l)                          # (tile_b, 1)
        o_ref[0] = jnp.broadcast_to(norm, (norm.shape[0], 128)).astype(o_ref.dtype)


def _choose_row_tile(batch: int, max_rows: int = 256) -> int:
    """Largest divisor of `batch` <= cap; cap <= batch//2 when batch >= 16 so the
    'parallel' grid axis has >= 2 steps and both v7x TensorCores get work."""
    cap = min(batch, max_rows)
    if batch >= 16:
        cap = min(cap, batch // 2)
    for t in range(cap, 0, -1):
        if batch % t == 0:
            return t
    return 1


def _choose_col_tiles(k_chunks: int, tile_b: int, itemsize: int,
                      block_bytes: int = _BLOCK_BYTES):
    """Pick tile_k (in 128-lane chunks) from a byte budget; pad K up to a multiple
    of tile_k instead of shrinking the tile (zeros don't change sum of squares)."""
    per_chunk_bytes = tile_b * 128 * itemsize
    budget = max(8, (block_bytes // max(1, per_chunk_bytes)) // 8 * 8)
    if k_chunks <= budget:
        return k_chunks, k_chunks                 # single column step, full-dim block
    n_steps = math.ceil(k_chunks / budget)
    tile_k = math.ceil(math.ceil(k_chunks / n_steps) / 8) * 8
    return tile_k, n_steps * tile_k               # padding < 8 chunks per step


def path_length_norm(gradients: jax.Array) -> jax.Array:
    """norm[b] = sqrt( mean_l sum_d gradients[b, l, d]^2 ), computed in Pallas.

    Accepts f32 or bf16 gradients (bf16 halves the HBM traffic of this strictly
    read-bandwidth-bound kernel); accumulation is always f32.
    """
    B, L, D = gradients.shape
    cols = L * D
    itemsize = gradients.dtype.itemsize

    tile_b = _choose_row_tile(B)
    grid_b = B // tile_b

    k0 = -(-cols // 128)                               # 128-lane chunks (ceil)
    tile_k, k_pad = _choose_col_tiles(k0, tile_b, itemsize)
    grid_k = k_pad // tile_k
    cols_pad = k_pad * 128

    g2d = gradients.reshape(B, cols)                   # free: contiguous reshape
    if cols_pad != cols:
        # Zero-pad (one extra HBM copy) only for awkward L*D; zeros add 0 to sum(g^2).
        g2d = jnp.pad(g2d, ((0, 0), (0, cols_pad - cols)))
    g3d = g2d.reshape(B, k_pad, 128)                   # lane-dense, free reshape

    kernel = functools.partial(_path_length_norm_kernel, 1.0 / float(L))

    out = pl.pallas_call(
        kernel,
        out_shape=jax.ShapeDtypeStruct((grid_b, tile_b, 128), jnp.float32),
        grid_spec=pltpu.PrefetchScalarGridSpec(
            num_scalar_prefetch=0,
            grid=(grid_b, grid_k),
            in_specs=[pl.BlockSpec((tile_b, tile_k, 128), lambda i, j: (i, j, 0))],
            out_specs=pl.BlockSpec((1, tile_b, 128), lambda i, j: (i, 0, 0)),
            scratch_shapes=[pltpu.VMEM((tile_b, 128), jnp.float32)],
        ),
        compiler_params=pltpu.CompilerParams(
            dimension_semantics=("parallel", "arbitrary"),
            vmem_limit_bytes=_VMEM_LIMIT,
        ),
        cost_estimate=pl.CostEstimate(
            flops=2 * B * cols,
            transcendentals=0,
            bytes_accessed=B * cols * itemsize + 4 * B,
        ),
    )(g3d)
    return out[:, :, 0].reshape(B)


class PathLengthPenaltyJax:
    """Mirror of the PyTorch module. Buffers (steps, exp_sum_a) live on the object.

    Note: steps/exp_sum_a are mutated Python attributes; wrap the state explicitly
    before putting forward() under jax.jit in a training loop.
    """

    def __init__(self, beta: float, generator_fn):
        self.beta = float(beta)
        self.generator_fn = generator_fn
        self.steps = jnp.zeros((), jnp.float32)
        self.exp_sum_a = jnp.zeros((), jnp.float32)

    def forward(self, w: jax.Array, x: jax.Array, key: jax.Array) -> jax.Array:
        _, _, H, W = x.shape
        image_size = H * W
        y = jax.random.normal(key, x.shape, dtype=x.dtype)
        scale = 1.0 / math.sqrt(float(image_size))

        # TODO(synk): torch.autograd.grad through the external generator graph has
        # no Pallas equivalent; it is computed with jax.grad over generator_fn.
        def projected_output(w_):
            return jnp.sum(self.generator_fn(w_) * y) * scale

        gradients = jax.grad(projected_output)(w)          # (B, L, D)

        # TODO(synk): at production StyleGAN2 sizes (B<=64, L<=18, D=512 -> ~2.5 MiB)
        # this reduction is launch/DMA-overhead dominated; fusing sum-of-squares into
        # the generator backward (or emitting bf16 grads) moves the needle more than
        # kernel tuning. The kernel pays off when B*L*D is tens of MiB or more.
        norm = path_length_norm(gradients)                 # Pallas kernel -> (B,)

        denom = 1.0 - self.beta ** self.steps
        a = self.exp_sum_a / jnp.where(denom > 0.0, denom, 1.0)
        loss = jnp.where(self.steps > 0.0,
                         jnp.mean((norm - a) ** 2),
                         jnp.zeros((), jnp.float32))

        mean = jax.lax.stop_gradient(jnp.mean(norm))
        self.exp_sum_a = self.exp_sum_a * self.beta + mean * (1.0 - self.beta)
        self.steps = self.steps + 1.0
        return loss


if __name__ == "__main__":
    key = jax.random.PRNGKey(0)
    k_w, k_gen, k_noise0, k_noise1, k_check = jax.random.split(key, 5)

    B, L, D = 2, 8, 32          # latent w: [batch, n_gen_blocks, d_latent]
    C, H, W = 4, 16, 16         # generated image x: [batch, C, H, W]

    w = jax.random.normal(k_w, (B, L, D), dtype=jnp.float32)

    # Tiny stand-in for the StyleGAN2 generator: a fixed linear map w -> x so a
    # differentiable w -> x graph exists (mirrors the torch autograd graph).
    proj = jax.random.normal(k_gen, (L * D, C * H * W), dtype=jnp.float32)
    proj = proj / math.sqrt(float(L * D))

    def generator_fn(w_):
        return (w_.reshape(w_.shape[0], L * D) @ proj).reshape(w_.shape[0], C, H, W)

    x = jax.block_until_ready(generator_fn(w))

    plp = PathLengthPenaltyJax(beta=0.99, generator_fn=generator_fn)

    loss0 = jax.block_until_ready(plp.forward(w, x, k_noise0))   # steps == 0 -> 0
    loss1 = jax.block_until_ready(plp.forward(w, x, k_noise1))   # uses EMA

    # Reference check of the Pallas norm kernel against plain JAX.
    y = jax.random.normal(k_check, x.shape, dtype=x.dtype)
    grads = jax.grad(
        lambda w_: jnp.sum(generator_fn(w_) * y) / math.sqrt(float(H * W)))(w)
    norm_pl = jax.block_until_ready(path_length_norm(grads))
    norm_ref = jnp.sqrt(jnp.mean(jnp.sum(grads.astype(jnp.float32) ** 2, axis=2),
                                 axis=1))

    assert norm_pl.shape == (B,)
    assert jnp.allclose(norm_pl, norm_ref, atol=1e-5, rtol=1e-5)
    assert float(loss0) == 0.0
    assert bool(jnp.isfinite(loss1))
    print("KERNEL_OK")
</pallas_src>

<mosaic_0001>
module attributes {stable_mosaic.version = 11 : i64} {
  func.func @_path_length_norm_kernel(%arg0: i32, %arg1: i32, %arg2: memref<2x2x128xf32, #tpu.memory_space<vmem>>, %arg3: memref<1x2x128xf32, #tpu.memory_space<vmem>>, %arg4: memref<2x128xf32, #tpu.memory_space<vmem>>) attributes {dimension_semantics = [#tpu.dimension_semantics<parallel>, #tpu.dimension_semantics<arbitrary>], iteration_bounds = array<i64: 1, 1>, scalar_prefetch = 0 : i64, scratch_operands = 1 : i64, tpu.core_type = #tpu.core_type<tc>, window_params = [{transform_indices = @transform_0, window_bounds = array<i64: 2, 2, 128>}, {transform_indices = @transform_1, window_bounds = array<i64: 1, 2, 128>}]} {
    %c0_i32 = arith.constant 0 : i32
    %0 = arith.cmpi eq, %arg1, %c0_i32 : i32
    %1 = arith.extui %0 : i1 to i32
    %c0_i32_0 = arith.constant 0 : i32
    %2 = arith.cmpi ne, %1, %c0_i32_0 : i32
    scf.if %2 {
      %cst_9 = arith.constant 0.000000e+00 : f32
      %12 = vector.broadcast %cst_9 : f32 to vector<2x128xf32>
      %c0_10 = arith.constant 0 : index
      %c0_11 = arith.constant 0 : index
      %13 = vector.load %arg4[%c0_10, %c0_11] : memref<2x128xf32, #tpu.memory_space<vmem>>, vector<2x128xf32>
      tpu.vector_store %arg4[%c0_10, %c0_11], %12 {strides = array<i32>} : memref<2x128xf32, #tpu.memory_space<vmem>>, vector<2x128xf32>,
    } else {
    }
    %c0 = arith.constant 0 : index
    %c0_1 = arith.constant 0 : index
    %c0_2 = arith.constant 0 : index
    %3 = vector.load %arg2[%c0, %c0_1, %c0_2] : memref<2x2x128xf32, #tpu.memory_space<vmem>>, vector<2x2x128xf32>
    %c0_3 = arith.constant 0 : index
    %c0_4 = arith.constant 0 : index
    %4 = vector.load %arg4[%c0_3, %c0_4] : memref<2x128xf32, #tpu.memory_space<vmem>>, vector<2x128xf32>
    %5 = arith.mulf %3, %3 : vector<2x2x128xf32>
    %cst = arith.constant dense<0.000000e+00> : vector<2x128xf32>
    %6 = vector.multi_reduction <add>, %5, %cst [1] : vector<2x2x128xf32> to vector<2x128xf32>
    %7 = arith.addf %4, %6 : vector<2x128xf32>
    %c0_5 = arith.constant 0 : index
    %c0_6 = arith.constant 0 : index
    %8 = vector.load %arg4[%c0_5, %c0_6] : memref<2x128xf32, #tpu.memory_space<vmem>>, vector<2x128xf32>
    tpu.vector_store %arg4[%c0_5, %c0_6], %7 {strides = array<i32>} : memref<2x128xf32, #tpu.memory_space<vmem>>, vector<2x128xf32>,
    %c0_i32_7 = arith.constant 0 : i32
    %9 = arith.cmpi eq, %arg1, %c0_i32_7 : i32
    %10 = arith.extui %9 : i1 to i32
    %c0_i32_8 = arith.constant 0 : i32
    %11 = arith.cmpi ne, %10, %c0_i32_8 : i32
    scf.if %11 {
      %c0_9 = arith.constant 0 : index
      %c0_10 = arith.constant 0 : index
      %12 = vector.load %arg4[%c0_9, %c0_10] : memref<2x128xf32, #tpu.memory_space<vmem>>, vector<2x128xf32>
      %cst_11 = arith.constant dense<0.000000e+00> : vector<2xf32>
      %13 = vector.multi_reduction <add>, %12, %cst_11 [1] : vector<2x128xf32> to vector<2xf32>
      %14 = vector.shape_cast %13 : vector<2xf32> to vector<2x1xf32>
      %cst_12 = arith.constant 1.250000e-01 : f32
      %15 = vector.broadcast %cst_12 : f32 to vector<2x1xf32>
      %16 = arith.mulf %14, %15 : vector<2x1xf32>
      %17 = math.sqrt %16 : vector<2x1xf32>
      %18 = vector.shape_cast %17 : vector<2x1xf32> to vector<2x1xf32>
      %19 = vector.broadcast %18 : vector<2x1xf32> to vector<2x128xf32>
      %c0_13 = arith.constant 0 : index
      %c0_14 = arith.constant 0 : index
      %c0_15 = arith.constant 0 : index
      %20 = vector.load %arg3[%c0_13, %c0_14, %c0_15] : memref<1x2x128xf32, #tpu.memory_space<vmem>>, vector<1x2x128xf32>
      %21 = vector.shape_cast %20 : vector<1x2x128xf32> to vector<2x128xf32>
      %22 = vector.shape_cast %19 : vector<2x128xf32> to vector<1x2x128xf32>
      tpu.vector_store %arg3[%c0_13, %c0_14, %c0_15], %22 {strides = array<i32>} : memref<1x2x128xf32, #tpu.memory_space<vmem>>, vector<1x2x128xf32>,
    } else {
    }
    return
  }
  func.func @transform_0(%arg0: i32, %arg1: i32) -> (i32, i32, i32) {
    %c0_i32 = arith.constant 0 : i32
    %c0_i32_0 = arith.constant 0 : i32
    return %arg0, %arg1, %c0_i32 : i32, i32, i32
  }
  func.func @transform_1(%arg0: i32, %arg1: i32) -> (i32, i32, i32) {
    %c0_i32 = arith.constant 0 : i32
    %c0_i32_0 = arith.constant 0 : i32
    %c0_i32_1 = arith.constant 0 : i32
    return %arg0, %c0_i32, %c0_i32_0 : i32, i32, i32
  }
}

</mosaic_0001>

<bundles_post_ra>
// kernel: tpu_custom_call.1
= control target key start
LH: loop header
LB: loop body
LE: loop exit
PB: predicated region body
PF: predicated region fallthrough
CT: control target
= control target key end

     0   :  { %6 = vsyncpa [#allocation4], 0  ;;  %s183_s0 = inlined_call_operand.hbm [shape: f32[2,2,128], index: 0, kind: input, shape index: {}]   ;;  %s184_s1 = inlined_call_operand.hbm [shape: f32[1,2,128], index: 1, kind: output, shape index: {}]  }
   0x1   :  { %7 = vsyncpa [#allocation5], 0  ;;  %s141_s6 = smov [#allocation3]   ;;  %s93_s10 = scalar_lea.hbm %s183_s0, 64 }
   0x2   :  { %s13_s7 = sshll.u32 %s141_s6, 4  ;;  %p94_p0 = scmp.ne.s32.totalorder %s183_s0, %s93_s10  ;;  %s14_s7 = int_to_ptr.vmem [resolvable:$true] %s13_s7 }
   0x3   :  { %p97_p1 = scmp.lt.u32.totalorder %s93_s10, %s183_s0 }
   0x5   :  { %p99_p2 = pnand %p97_p1, %p94_p0 }
   0x7   :  { %102 = shalt.err (!%p99_p2)
}
   0x8   :  { %s103_s15 = scalar_lea.vmem %s14_s7, 64  ;;  %p108_p4 = scmp.lt.s32.totalorder %s14_s7, %s14_s7 }
   0x9   :  { %p104_p3 = scmp.ne.s32.totalorder %s14_s7, %s103_s15  ;;  %p109_p5 = scmp.lt.s32.totalorder %s103_s15, %s103_s15 }
   0xb   :  { %p110_p6 = por %p109_p5, %p108_p4 }
   0xd   :  { %p111_p7 = pnand %p110_p6, %p104_p3 }
   0xf   :  { %114 = shalt.err (!%p111_p7)
}
  0x10   :  { %s142_s16 = smov 32   ;;  %s143_s17 = smov 2  }
  0x11   :  { %19 = dma.hbm_to_vmem [thread:$0]  %s183_s0, 64, %s14_s7, [#allocation4], %s142_s16, %s142_s16, %s143_s17  }
  0x12   :  { %137 = dma.done.wait [#allocation4], 64  }
  0x13   :  { %138 = vsyncadd [#allocation4], 4294967232  ;;  %v144_v0 = vmov 0.0   ;;  %v28_v1 = vld [vmem:[#allocation3] sm:$0x3]  ;;  %vm33_vm0 = vcmask 1041408  }
  0x14   :  { %27 = vst [vmem:[#allocation2] sm:$0x3] %v144_v0  ;;  %v29_v2 = vld [vmem:[#allocation3 + $0x2] sm:$0x3]  ;;  %v31_v3 = vmul.f32 %v28_v1, %v28_v1  ;;  %vm50_vm1 = vcmask 1041409   ;;  %s145_s0 = smov [#allocation6]  }
  0x15   :  { %v32_v4 = vmul.f32 %v29_v2, %v29_v2  ;;  %s77_s20 = sshll.u32 %s145_s0, 4  ;;  %s78_s20 = int_to_ptr.vmem [resolvable:$true] %s77_s20 }
  0x16   :  { %v34_v5 = vsel %vm33_vm0, %v31_v3, 0.0  ;;  %s115_s21 = scalar_lea.vmem %s78_s20, 32  ;;  %p120_p9 = scmp.lt.s32.totalorder %s78_s20, %s78_s20 }
  0x17   :  { %v41_v6 = vsel %vm33_vm0, %v32_v4, 0.0  ;;  %v35_v7 = vrot.slane %v34_v5, 4  ;;  %p116_p8 = scmp.ne.s32.totalorder %s78_s20, %s115_s21  ;;  %p121_p10 = scmp.lt.s32.totalorder %s115_s21, %s115_s21 }
  0x18   :  { %v42_v8 = vrot.slane %v41_v6, 4 }
  0x19   :  { %v36_v9 = vadd.f32 %v35_v7, %v34_v5  ;;  %p122_p11 = por %p121_p10, %p120_p9 }
  0x1a   :  { %v43_v10 = vadd.f32 %v42_v8, %v41_v6 }
  0x1b   :  { %v37_v11 = vrot.slane %v36_v9, 2  ;;  %v30_v17 = vld [vmem:[#allocation2] sm:$0x3]  ;;  %p123_p12 = pnand %p122_p11, %p116_p8 }
  0x1c   :  { %v44_v12 = vrot.slane %v43_v10, 2 }
  0x1d   :  { %v38_v13 = vadd.f32 %v37_v11, %v36_v9 }
  0x1e   :  { %v45_v14 = vadd.f32 %v44_v12, %v43_v10 }
  0x1f   :  { %v39_v15 = vrot.slane %v38_v13, 1 }
  0x20   :  { %v46_v16 = vrot.slane %v45_v14, 1 }
  0x21   :  { %v40_v18 = vadd.f32 %v39_v15, %v38_v13 }
  0x22   :  { %v47_v19 = vadd.f32 %v46_v16, %v45_v14 }
  0x24   :  { %v51_v20 = vsel %vm50_vm1, %v47_v19, %v40_v18 }
  0x25   :  { %v53_v21 = vadd.f32 %v51_v20, %v30_v17 }
  0x27   :  { %54 = vst [vmem:[#allocation2] sm:$0x3] %v53_v21 }
  0x2e   :  { %v58_v22 = vld [vmem:[#allocation2] sm:$0x3] }
  0x2f   :  { %v59_v23 = vsel %vm33_vm0, %v58_v22, 0.0 }
  0x30   :  { %60 = vadd.xlane.f32.xlu0 %v59_v23 }
  0xbd   :  { %v61_v24 = vpop.xlane.xlu0 %60 }
  0xbe   :  { %v62_v25 = vmul.f32 0.125, %v61_v24 }
  0xc0   :  { %91 = vrsqrt.f32 %v62_v25  ;;  %vm65_vm2 = vcmp.eq.f32.partialorder %v62_v25, inf  ;;  %v68_v28 = vand.u32 2147483648, %v62_v25  ;;  %vm67_vm3 = vcmp.eq.f32.partialorder %v62_v25, 0.0 }
  0xca   :  { %v92_v26 = vpop.eup %91 }
  0xcb   :  { %v64_v27 = vmul.f32 %v92_v26, %v62_v25 }
  0xcd   :  { %v66_v29 = vsel %vm65_vm2, %v62_v25, %v64_v27 }
  0xce   :  { %v69_v30 = vsel %vm67_vm3, %v68_v28, %v66_v29 }
  0xcf   :  { %70 = vst [vmem:[#allocation6] sm:$0x3] %v69_v30 }
  0xd0   :  { %126 = shalt.err (!%p123_p12)
}
  0xd1   :  { %s127_s24 = scalar_lea.hbm %s184_s1, 32 }
  0xd2   :  { %p128_p13 = scmp.ne.s32.totalorder %s184_s1, %s127_s24  ;;  %p131_p0 = scmp.lt.u32.totalorder %s127_s24, %s184_s1 }
  0xd4   :  { %p133_p1 = pnand %p131_p0, %p128_p13 }
  0xd6   :  { %136 = shalt.err (!%p133_p1)
}
  0xd7   :  { %80 = dma.vmem_to_hbm [thread:$0]  %s78_s20, 32, %s184_s1, [#allocation5]  }
  0xd8   :  { %139 = dma.done.wait [#allocation5], 32  }
  0xd9   :  { %140 = vsyncadd [#allocation5], 4294967264 }
  0xda   :  { %84 = vsyncpa [#allocation4], 1 }
  0xdb   :  { %85 = vsyncpa [#allocation5], 1 }

</bundles_post_ra>
